<compile_context>
chip_gen: v5e
topology: v5e:2x2
jax: 0.10.0
libtpu: 0.0.40
codegen_flags: <defaults>
</compile_context>

<pallas_src>
import numpy as np
import jax
import jax.numpy as jnp
from jax.experimental import pallas as pl
from jax.experimental.pallas import tpu as pltpu


def _round_up(x, m):
    return -(-x // m) * m


def _vae_embed_kernel(ids_ref, mu_tbl_ref, lv_tbl_ref, eps_ref, z_ref, kld_ref):
    tb = ids_ref.shape[0]
    vocab = mu_tbl_ref.shape[0]

    # In-kernel gather: one-hot [tb, V] built on the VPU, lookup as a matmul
    # on the otherwise-idle MXU.  Rows carrying the sentinel id (== V, used
    # for batch padding) produce an all-zero one-hot row -> mu = lv = 0.
    ids = ids_ref[...]                                          # (tb, 1) int32
    col = jax.lax.broadcasted_iota(jnp.int32, (tb, vocab), 1)   # (tb, V)
    one_hot = (ids == col).astype(jnp.float32)                  # (tb, V)
    mu = jnp.dot(one_hot, mu_tbl_ref[...], preferred_element_type=jnp.float32)
    lv = jnp.dot(one_hot, lv_tbl_ref[...], preferred_element_type=jnp.float32)

    # Reparameterize: z = eps * exp(0.5*lv) + mu  (single EUP transcendental).
    std = jnp.exp(0.5 * lv)
    z_ref[...] = (eps_ref[...] * std + mu).astype(z_ref.dtype)

    # KLD terms; padded rows (mu = lv = 0) contribute exactly 0:
    #   -0.5 * (1 + 0 - 0 - exp(0)) = 0.
    var = std * std                                             # == exp(lv)
    t = -0.5 * (1.0 + lv - mu * mu - var)                       # (tb, D)
    # Reduce to a single scalar per tile (lane reduce then sublane reduce,
    # keepdims so every store stays vector-shaped).
    row = jnp.sum(t, axis=1, keepdims=True)                     # (tb, 1)
    kld_ref[...] = jnp.sum(row, axis=0, keepdims=True)[None]    # (1, 1, 1)


def _choose_tiling(batch, dims, vocab, max_tile_elems):
    """Pick (num_tiles, rows_per_tile, padded_batch)."""
    b8 = _round_up(batch, 8)
    # Cap tile rows by the per-array tile budget and by the one-hot footprint.
    max_tb = max(8, (max_tile_elems // max(dims, 1)) // 8 * 8)
    max_tb = min(max_tb, max(8, (max_tile_elems // max(vocab, 1)) // 8 * 8))
    # >= 2 tiles for mid/large batches so v7x megacore can shard the grid.
    min_tiles = 2 if b8 >= 512 else 1
    nt = max(min_tiles, -(-b8 // max_tb))
    groups = b8 // 8
    # Prefer a tile count that partitions b8 exactly: no batch padding means
    # no eps pad copy and no z un-pad slice in the wrapper.
    for cand in range(nt, min(nt + 8, groups) + 1):
        if groups % cand == 0 and (groups // cand) * 8 <= max_tb:
            tb = (groups // cand) * 8
            return cand, tb, cand * tb
    tb = min(max_tb, _round_up(-(-b8 // nt), 8))
    nt = -(-b8 // tb)
    return nt, tb, nt * tb


def vae_like_embeddings_forward(ids, mu_table, log_var_table, eps, *,
                                max_tile_elems=2048 * 128):
    """ids: [B] int, tables: [V, D] f32, eps: [B, D] f32 -> (z [B, D], kld scalar)."""
    B = int(ids.shape[0])
    V, D = mu_table.shape
    assert eps.shape == (B, D)
    # Design assumes a small name vocabulary (tables stay resident in VMEM).
    assert 2 * V * D * 4 <= 4 * 1024 * 1024, "embedding tables too large for VMEM residency"

    num_tiles, tb, B_pad = _choose_tiling(B, D, V, max_tile_elems)

    ids = ids.astype(jnp.int32)
    if B_pad > B:
        # Sentinel id == V selects no table row (zero mu/lv -> zero KLD term).
        ids = jnp.concatenate([ids, jnp.full((B_pad - B,), V, dtype=jnp.int32)])
        eps = jnp.pad(eps, ((0, B_pad - B), (0, 0)))
    ids2d = ids.reshape(B_pad, 1)

    z_pad, kld_parts = pl.pallas_call(
        _vae_embed_kernel,
        out_shape=(
            jax.ShapeDtypeStruct((B_pad, D), mu_table.dtype),
            jax.ShapeDtypeStruct((num_tiles, 1, 1), jnp.float32),
        ),
        grid=(num_tiles,),
        in_specs=[
            pl.BlockSpec((tb, 1), lambda i: (i, 0)),        # ids, per batch-tile
            pl.BlockSpec((V, D), lambda i: (0, 0)),         # mu table, VMEM-resident
            pl.BlockSpec((V, D), lambda i: (0, 0)),         # log_var table, resident
            pl.BlockSpec((tb, D), lambda i: (i, 0)),        # eps, per batch-tile
        ],
        out_specs=(
            pl.BlockSpec((tb, D), lambda i: (i, 0)),        # z
            pl.BlockSpec((1, 1, 1), lambda i: (i, 0, 0)),   # per-tile KLD scalar
        ),
        compiler_params=pltpu.CompilerParams(
            dimension_semantics=("parallel",),              # independent tiles
            vmem_limit_bytes=32 * 1024 * 1024,              # explicit (v5e default is 16 MiB)
        ),
    )(ids2d, mu_table, log_var_table, eps)

    z = z_pad if B_pad == B else z_pad[:B]
    kld = jnp.sum(kld_parts) / B                            # mean over true batch
    return z, kld


def _reference(ids, mu_table, log_var_table, eps):
    mu = mu_table[ids]
    lv = log_var_table[ids]
    z = eps * jnp.exp(0.5 * lv) + mu
    kld = jnp.mean(-0.5 * jnp.sum(1.0 + lv - mu**2 - jnp.exp(lv), axis=1), axis=0)
    return z, kld


def _check(ids, mu_table, log_var_table, eps):
    fwd = jax.jit(vae_like_embeddings_forward)
    z, kld = fwd(ids, mu_table, log_var_table, eps)
    jax.block_until_ready((z, kld))
    z_ref, kld_ref = _reference(ids, mu_table, log_var_table, eps)
    np.testing.assert_allclose(np.asarray(z), np.asarray(z_ref), rtol=1e-5, atol=1e-5)
    np.testing.assert_allclose(np.asarray(kld), np.asarray(kld_ref), rtol=1e-5, atol=1e-5)


if __name__ == "__main__":
    key = jax.random.PRNGKey(0)

    # --- Test 1: shapes implied by the module harness (B=8, D=32, V=5) -----
    n_dims = 32
    name_idx_mapping = {"a": 0, "b": 1, "c": 2, "d": 3, "e": 4}
    names = ["a", "c", "e", "b", "a", "d", "c", "e"]          # B = 8
    V = len(name_idx_mapping)

    k_mu, k_lv, k_eps, k2 = jax.random.split(key, 4)
    # NOTE: the PyTorch module zero-inits both tables (reset_parameters(_zero_param)),
    # which would make the forward degenerate (z == eps, kld == 0).  Use small
    # non-zero tables so the gather / elementwise / KLD path is exercised; the
    # 0.1 scale keeps row norms < sqrt(n_dims), so Embedding max_norm is a no-op.
    mu_table = 0.1 * jax.random.normal(k_mu, (V, n_dims), dtype=jnp.float32)
    log_var_table = 0.1 * jax.random.normal(k_lv, (V, n_dims), dtype=jnp.float32)

    # names -> ids (host-side glue, mirrors LatentCodeEmbeddings._names_to_ids)
    ids = jnp.asarray([name_idx_mapping[n] for n in names], dtype=jnp.int32)
    eps = jax.random.normal(k_eps, (ids.shape[0], n_dims), dtype=jnp.float32)
    _check(ids, mu_table, log_var_table, eps)

    # --- Test 2: larger case exercising the multi-tile path ----------------
    V2, D2, B2 = 11, 96, 600
    k_mu2, k_lv2, k_ids2, k_eps2, k3 = jax.random.split(k2, 5)
    mu_table2 = 0.1 * jax.random.normal(k_mu2, (V2, D2), dtype=jnp.float32)
    log_var_table2 = 0.1 * jax.random.normal(k_lv2, (V2, D2), dtype=jnp.float32)
    ids2 = jax.random.randint(k_ids2, (B2,), 0, V2, dtype=jnp.int32)
    eps2 = jax.random.normal(k_eps2, (B2, D2), dtype=jnp.float32)
    _check(ids2, mu_table2, log_var_table2, eps2)

    # --- Test 3: batch not a multiple of 8 (exercises sentinel-id padding) -
    V3, D3, B3 = 7, 40, 13
    k_mu3, k_lv3, k_ids3, k_eps3 = jax.random.split(k3, 4)
    mu_table3 = 0.1 * jax.random.normal(k_mu3, (V3, D3), dtype=jnp.float32)
    log_var_table3 = 0.1 * jax.random.normal(k_lv3, (V3, D3), dtype=jnp.float32)
    ids3 = jax.random.randint(k_ids3, (B3,), 0, V3, dtype=jnp.int32)
    eps3 = jax.random.normal(k_eps3, (B3, D3), dtype=jnp.float32)
    _check(ids3, mu_table3, log_var_table3, eps3)

    print("KERNEL_OK")
</pallas_src>

<mosaic_0001>
module attributes {stable_mosaic.version = 11 : i64} {
  func.func @_vae_embed_kernel(%arg0: i32, %arg1: memref<8x1xi32, #tpu.memory_space<vmem>>, %arg2: memref<5x32xf32, #tpu.memory_space<vmem>>, %arg3: memref<5x32xf32, #tpu.memory_space<vmem>>, %arg4: memref<8x32xf32, #tpu.memory_space<vmem>>, %arg5: memref<8x32xf32, #tpu.memory_space<vmem>>, %arg6: memref<1x1x1xf32, #tpu.memory_space<vmem>>) attributes {dimension_semantics = [#tpu.dimension_semantics<parallel>], iteration_bounds = array<i64: 1>, scalar_prefetch = 0 : i64, scratch_operands = 0 : i64, tpu.core_type = #tpu.core_type<tc>, window_params = [{transform_indices = @transform_0, window_bounds = array<i64: 8, 1>}, {pipeline_mode = #tpu.pipeline_mode<synchronous>, transform_indices = @transform_1, window_bounds = array<i64: 5, 32>}, {pipeline_mode = #tpu.pipeline_mode<synchronous>, transform_indices = @transform_2, window_bounds = array<i64: 5, 32>}, {transform_indices = @transform_3, window_bounds = array<i64: 8, 32>}, {transform_indices = @transform_4, window_bounds = array<i64: 8, 32>}, {transform_indices = @transform_5, window_bounds = array<i64: 1, 1, 1>}]} {
    %c0 = arith.constant 0 : index
    %c0_0 = arith.constant 0 : index
    %0 = vector.load %arg1[%c0, %c0_0] : memref<8x1xi32, #tpu.memory_space<vmem>>, vector<8x1xi32>
    %1 = tpu.iota {dimensions = array<i32: 1>} : vector<8x5xi32>
    %2 = vector.broadcast %0 : vector<8x1xi32> to vector<8x5xi32>
    %3 = arith.cmpi eq, %2, %1 : vector<8x5xi32>
    %4 = arith.extui %3 : vector<8x5xi1> to vector<8x5xi32>
    %5 = arith.sitofp %4 : vector<8x5xi32> to vector<8x5xf32>
    %c0_1 = arith.constant 0 : index
    %c0_2 = arith.constant 0 : index
    %6 = vector.load %arg2[%c0_1, %c0_2] : memref<5x32xf32, #tpu.memory_space<vmem>>, vector<5x32xf32>
    %cst = arith.constant dense<0.000000e+00> : vector<8x32xf32>
    %7 = tpu.matmul %5, %6, %cst {dimension_numbers = #tpu.dot_dimension_numbers<[1], [0], [0], [1], [0, 0, 1, 1], [], []>} : vector<8x5xf32>, vector<5x32xf32>, vector<8x32xf32> -> vector<8x32xf32>
    %c0_3 = arith.constant 0 : index
    %c0_4 = arith.constant 0 : index
    %8 = vector.load %arg3[%c0_3, %c0_4] : memref<5x32xf32, #tpu.memory_space<vmem>>, vector<5x32xf32>
    %cst_5 = arith.constant dense<0.000000e+00> : vector<8x32xf32>
    %9 = tpu.matmul %5, %8, %cst_5 {dimension_numbers = #tpu.dot_dimension_numbers<[1], [0], [0], [1], [0, 0, 1, 1], [], []>} : vector<8x5xf32>, vector<5x32xf32>, vector<8x32xf32> -> vector<8x32xf32>
    %cst_6 = arith.constant 5.000000e-01 : f32
    %10 = vector.broadcast %cst_6 : f32 to vector<8x32xf32>
    %11 = arith.mulf %10, %9 : vector<8x32xf32>
    %12 = math.exp %11 : vector<8x32xf32>
    %c0_7 = arith.constant 0 : index
    %c0_8 = arith.constant 0 : index
    %13 = vector.load %arg4[%c0_7, %c0_8] : memref<8x32xf32, #tpu.memory_space<vmem>>, vector<8x32xf32>
    %14 = arith.mulf %13, %12 : vector<8x32xf32>
    %15 = arith.addf %14, %7 : vector<8x32xf32>
    %c0_9 = arith.constant 0 : index
    %c0_10 = arith.constant 0 : index
    %16 = vector.load %arg5[%c0_9, %c0_10] : memref<8x32xf32, #tpu.memory_space<vmem>>, vector<8x32xf32>
    tpu.vector_store %arg5[%c0_9, %c0_10], %15 {strides = array<i32>} : memref<8x32xf32, #tpu.memory_space<vmem>>, vector<8x32xf32>,
    %17 = arith.mulf %12, %12 : vector<8x32xf32>
    %cst_11 = arith.constant 1.000000e+00 : f32
    %18 = vector.broadcast %cst_11 : f32 to vector<8x32xf32>
    %19 = arith.addf %18, %9 : vector<8x32xf32>
    %20 = arith.mulf %7, %7 : vector<8x32xf32>
    %21 = arith.subf %19, %20 : vector<8x32xf32>
    %22 = arith.subf %21, %17 : vector<8x32xf32>
    %cst_12 = arith.constant -5.000000e-01 : f32
    %23 = vector.broadcast %cst_12 : f32 to vector<8x32xf32>
    %24 = arith.mulf %23, %22 : vector<8x32xf32>
    %cst_13 = arith.constant dense<0.000000e+00> : vector<8xf32>
    %25 = vector.multi_reduction <add>, %24, %cst_13 [1] : vector<8x32xf32> to vector<8xf32>
    %26 = vector.shape_cast %25 : vector<8xf32> to vector<8x1xf32>
    %cst_14 = arith.constant dense<0.000000e+00> : vector<1xf32>
    %27 = vector.multi_reduction <add>, %26, %cst_14 [0] : vector<8x1xf32> to vector<1xf32>
    %28 = vector.shape_cast %27 : vector<1xf32> to vector<1x1xf32>
    %29 = vector.shape_cast %28 : vector<1x1xf32> to vector<1x1x1xf32>
    %c0_15 = arith.constant 0 : index
    %c0_16 = arith.constant 0 : index
    %c0_17 = arith.constant 0 : index
    %30 = vector.load %arg6[%c0_15, %c0_16, %c0_17] : memref<1x1x1xf32, #tpu.memory_space<vmem>>, vector<1x1x1xf32>
    tpu.vector_store %arg6[%c0_15, %c0_16, %c0_17], %29 {strides = array<i32>} : memref<1x1x1xf32, #tpu.memory_space<vmem>>, vector<1x1x1xf32>,
    return
  }
  func.func @transform_0(%arg0: i32) -> (i32, i32) {
    %c0_i32 = arith.constant 0 : i32
    %c0_i32_0 = arith.constant 0 : i32
    return %arg0, %c0_i32 : i32, i32
  }
  func.func @transform_1(%arg0: i32) -> (i32, i32) {
    %c0_i32 = arith.constant 0 : i32
    %c0_i32_0 = arith.constant 0 : i32
    %c0_i32_1 = arith.constant 0 : i32
    return %c0_i32, %c0_i32_0 : i32, i32
  }
  func.func @transform_2(%arg0: i32) -> (i32, i32) {
    %c0_i32 = arith.constant 0 : i32
    %c0_i32_0 = arith.constant 0 : i32
    %c0_i32_1 = arith.constant 0 : i32
    return %c0_i32, %c0_i32_0 : i32, i32
  }
  func.func @transform_3(%arg0: i32) -> (i32, i32) {
    %c0_i32 = arith.constant 0 : i32
    %c0_i32_0 = arith.constant 0 : i32
    return %arg0, %c0_i32 : i32, i32
  }
  func.func @transform_4(%arg0: i32) -> (i32, i32) {
    %c0_i32 = arith.constant 0 : i32
    %c0_i32_0 = arith.constant 0 : i32
    return %arg0, %c0_i32 : i32, i32
  }
  func.func @transform_5(%arg0: i32) -> (i32, i32, i32) {
    %c0_i32 = arith.constant 0 : i32
    %c0_i32_0 = arith.constant 0 : i32
    %c0_i32_1 = arith.constant 0 : i32
    return %arg0, %c0_i32, %c0_i32_0 : i32, i32, i32
  }
}

</mosaic_0001>

<bundles_post_ra>
// kernel: vae_like_embeddings_forward.1
= control target key start
LH: loop header
LB: loop body
LE: loop exit
PB: predicated region body
PF: predicated region fallthrough
CT: control target
= control target key end

     0   :  { %11 = vsyncpa [#allocation3], 0  ;;  %s342_s0 = inlined_call_operand.vmem [shape: s32[8,1], index: 0, kind: input, shape index: {}]   ;;  %s343_s1 = inlined_call_operand.vmem [shape: f32[5,32], index: 1, kind: input, shape index: {}]   ;;  %s344_s2 = inlined_call_operand.hbm [shape: f32[5,32], index: 2, kind: input, shape index: {}]   ;;  %s345_s3 = inlined_call_operand.hbm [shape: f32[8,32], index: 3, kind: input, shape index: {}]   ;;  %s346_s4 = inlined_call_operand.hbm [shape: f32[8,32], index: 4, kind: output, shape index: {0}]   ;;  %s347_s5 = inlined_call_operand.hbm [shape: f32[1,1,1], index: 5, kind: output, shape index: {1}]  }
   0x1   :  { %12 = vsyncpa [#allocation6], 0 }
   0x2   :  { %13 = vsyncpa [#allocation4], 0 }
   0x3   :  { %14 = vsyncpa [#allocation9], 0  ;;  %s24_s20 = sshll.u32 %s344_s2, 4  ;;  %s288_s21 = smov [#allocation2]   ;;  %s25_s20 = int_to_ptr.hbm [resolvable:$true] %s24_s20 }
   0x4   :  { %s26_s22 = sshll.u32 %s288_s21, 4  ;;  %s35_s25 = sshll.u32 %s345_s3, 4  ;;  %s27_s22 = int_to_ptr.vmem [resolvable:$true] %s26_s22  ;;  %s36_s25 = int_to_ptr.hbm [resolvable:$true] %s35_s25 }
   0x5   :  { %29 = dma.hbm_to_vmem [thread:$0]  %s25_s20, 128, %s27_s22, [#allocation3]  }
   0x6   :  { %s289_s26 = smov [#allocation5]  }
   0x7   :  { %s37_s27 = sshll.u32 %s289_s26, 4  ;;  %s38_s27 = int_to_ptr.vmem [resolvable:$true] %s37_s27 }
   0x8   :  { %40 = dma.hbm_to_vmem [thread:$0]  %s36_s25, 128, %s38_s27, [#allocation6]  }
   0x9   :  { %280 = dma.done.wait [#allocation3], 128  }
   0xa   :  { %281 = vsyncadd [#allocation3], 4294967168 }
   0xb   :  { %282 = dma.done.wait [#allocation6], 128  }
   0xc   :  { %283 = vsyncadd [#allocation6], 4294967168  ;;  %v290_v0 = vmov 0   ;;  %v49_v1 = vld [vmem:[%s342_s0] sm:$0xff]  ;;  %vm63_vm0 = vcmask 1044480   ;;  %v50_v4 = vlaneseq  ;;  %vm59_vm1 = vcmask 39936  }
   0xd   :  { %181 = vset.pattern.permute.xlu0 %v290_v0  ;;  %v58_v2 = vld [vmem:[%s343_s1] sm:$0x1f]  ;;  %v291_v7 = vmov 0.0   ;;  %v114_v15 = vld [vmem:[#allocation5] sm:$0xff]  ;;  %vm117_vm3 = vcmask 261120   ;;  %s143_s3 = sshll.u32 %s346_s4, 4  ;;  %s144_s3 = int_to_ptr.hbm [resolvable:$true] %s143_s3 }
   0xe   :  { %53 = vperm.xlu0 %181, %v49_v1   ;;  %v87_v3 = vld [vmem:[#allocation2] sm:$0x1f]  ;;  %171 = vmatpush.msk.msra.mxu0 %vm63_vm0, %v58_v2  ;;  %v51_v5 = vand.u32 127, %v50_v4  ;;  %s292_s6 = smov [#allocation7]   ;;  %s293_s8 = smov [#allocation8]   ;;  %vm134_vm4 = vcmask 0  }
   0xf   :  { %173 = vmatpush.msk.msra.mxu1 %vm63_vm0, %v87_v3  ;;  %s141_s7 = sshll.u32 %s292_s6, 4  ;;  %s152_s9 = sshll.u32 %s293_s8, 4  ;;  %s142_s7 = int_to_ptr.vmem [resolvable:$true] %s141_s7  ;;  %s153_s9 = int_to_ptr.vmem [resolvable:$true] %s152_s9 }
  0x10   :  { %s154_s12 = sshll.u32 %s347_s5, 4  ;;  %s155_s12 = int_to_ptr.hbm [resolvable:$true] %s154_s12 }
  0x80   :  { %v54_v6 = vpop.permute.xlu0 %53 }
  0x81   :  { %vm55_vm2 = vcmp.eq.s32.totalorder %v54_v6, %v51_v5 }
  0x82   :  { %v170_v8 = vsel %vm55_vm2, 1.0, %v291_v7 }
  0x83   :  { %172 = vmatmul.msk.f32.vlgmr.msra.gmra.mxu0 %vm59_vm1, %v170_v8  ;;  %174 = vmatmul.msk.f32.vlgmr.msra.gmra.mxu1 %vm59_vm1, %v170_v8 }
 0x100   :  { %v108_v9 = vpop.f32.mrf.mxu1  ;;  %v84_v12 = vpop.f32.mrf.mxu0 }
 0x101   :  { %v111_v10 = vmul.f32 0.5, %v108_v9  ;;  %v121_v13 = vmul.f32 %v84_v12, %v84_v12  ;;  %v120_v14 = vadd.f32 1.0, %v108_v9 }
 0x103   :  { %v112_v11 = vmul.f32 1.442695, %v111_v10  ;;  %v122_v18 = vsub.f32 %v120_v14, %v121_v13 }
 0x105   :  { %182 = vpow2.f32 %v112_v11 }
 0x10b   :  { %v183_v16 = vpop.eup %182 }
 0x10c   :  { %v115_v17 = vmul.f32 %v183_v16, %v114_v15  ;;  %v119_v19 = vmul.f32 %v183_v16, %v183_v16 }
 0x10e   :  { %v123_v20 = vsub.f32 %v122_v18, %v119_v19  ;;  %v116_v21 = vadd.f32 %v115_v17, %v84_v12 }
 0x110   :  { %v124_v22 = vmul.f32 -0.5, %v123_v20  ;;  %118 = vst.msk [vmem:[#allocation7] sm:$0xff] %vm117_vm3, %v116_v21 }
 0x111   :  { %146 = dma.vmem_to_hbm [thread:$0]  %s142_s7, 128, %s144_s3, [#allocation4]  }
 0x112   :  { %v125_v23 = vsel %vm117_vm3, %v124_v22, 0.0 }
 0x113   :  { %126 = vadd.xlane.f32.xlu0 %v125_v23 }
 0x186   :  { %v127_v24 = vpop.xlane.xlu0 %126 }
 0x187   :  { %v128_v25 = vrot.slane %v127_v24, 4 }
 0x189   :  { %v129_v26 = vadd.f32 %v128_v25, %v127_v24 }
 0x18b   :  { %v130_v27 = vrot.slane %v129_v26, 2 }
 0x18d   :  { %v131_v28 = vadd.f32 %v130_v27, %v129_v26 }
 0x18f   :  { %v132_v29 = vrot.slane %v131_v28, 1 }
 0x191   :  { %v133_v30 = vadd.f32 %v132_v29, %v131_v28 }
 0x193   :  { %135 = vst.msk [vmem:[#allocation8] sm:$0x1] %vm134_vm4, %v133_v30 }
 0x194   :  { %157 = dma.vmem_to_hbm [thread:$0]  %s153_s9, 16, %s155_s12, [#allocation9]  }
 0x195   :  { %284 = dma.done.wait [#allocation4], 128  }
 0x196   :  { %285 = vsyncadd [#allocation4], 4294967168 }
 0x197   :  { %286 = dma.done.wait [#allocation9], 16  }
 0x198   :  { %287 = vsyncadd [#allocation9], 4294967280 }
 0x199   :  { %166 = vsyncpa [#allocation3], 1 }
 0x19a   :  { %167 = vsyncpa [#allocation6], 1 }
 0x19b   :  { %168 = vsyncpa [#allocation4], 1 }
 0x19c   :  { %169 = vsyncpa [#allocation9], 1 }

</bundles_post_ra>
